<compile_context>
chip_gen: v7x
topology: tpu7x:2x2x1
jax: 0.10.0
libtpu: 0.0.40
codegen_flags: <defaults>
</compile_context>

<pallas_src>
import functools

import jax
import jax.numpy as jnp
from jax.experimental import pallas as pl
from jax.experimental.pallas import tpu as pltpu


def _round_up(v, m):
    return -(-v // m) * m


# --------------------------------------------------------------------------- #
# Fused Pallas kernel:  y = x @ W_fused (+ bias_row)
# --------------------------------------------------------------------------- #
def _fused_linear_kernel(*refs, use_bias):
    if use_bias:
        x_ref, w_ref, b_ref, o_ref = refs
    else:
        x_ref, w_ref, o_ref = refs
        b_ref = None
    x = x_ref[...].astype(w_ref.dtype)               # (TM, K)  cast to weight dtype (bf16 path)
    w = w_ref[...]                                   # (K, BN)  alpha pre-folded, pre-transposed
    y = jax.lax.dot_general(                         # MXU, f32 accumulation
        x, w, dimension_numbers=(((1,), (0,)), ((), ())),
        preferred_element_type=jnp.float32)          # (TM, BN) f32
    if b_ref is not None:
        y = y + b_ref[...]                           # (1, BN) f32 broadcast
    o_ref[...] = y.astype(o_ref.dtype)


def fused_linear(x, w_kn, bias_row=None, *, block_m=1024, block_n=None):
    """x: (B, K) @ w_kn: (K, N) [+ bias_row: (1, N)] -> (B, N)."""
    B, K = x.shape
    Kw, N = w_kn.shape
    assert K == Kw

    # ---- batch tile: keep >= 2 grid steps for B > 64 so v7x megacore can shard the batch axis.
    if B <= 64:
        tm = B                                        # single block, any B allowed (full-dim rule)
    else:
        tm = min(block_m, _round_up(pl.cdiv(B, 2), 8))

    # ---- optional output-column tile (only when it divides N and is lane-dense).
    if block_n is not None and block_n % 128 == 0 and N % block_n == 0 and block_n < N:
        bn = block_n
    else:
        bn = N

    use_bias = bias_row is not None
    x_b, w_b, o_b = x.dtype.itemsize, w_kn.dtype.itemsize, x.dtype.itemsize

    def footprint(t):  # double-buffered per-step VMEM bytes
        f = 2 * (t * K * x_b + K * bn * w_b + t * bn * o_b)
        if use_bias:
            f += 2 * bn * 4
        return f

    # shrink the batch tile until the per-step footprint fits a v7x-safe budget (~40 MiB)
    while tm > 8 and footprint(tm) > (40 << 20):
        tm = max(8, _round_up(tm // 2, 8))

    grid_m = pl.cdiv(B, tm)
    grid_n = N // bn
    vmem_limit = int(max(32 << 20, min(footprint(tm) + (8 << 20), 64 << 20)))

    kernel = functools.partial(_fused_linear_kernel, use_bias=use_bias)

    if grid_n == 1:
        grid = (grid_m,)
        in_specs = [
            pl.BlockSpec((tm, K), lambda i: (i, 0)),      # batch tile of flat x
            pl.BlockSpec((K, N), lambda i: (0, 0)),       # fused weight, resident across grid
        ]
        if use_bias:
            in_specs.append(pl.BlockSpec((1, N), lambda i: (0, 0)))
        out_spec = pl.BlockSpec((tm, N), lambda i: (i, 0))
        dims = ("parallel",)
    else:
        grid = (grid_m, grid_n)
        in_specs = [
            pl.BlockSpec((tm, K), lambda i, j: (i, 0)),   # x tile, constant across j
            pl.BlockSpec((K, bn), lambda i, j: (0, j)),   # weight column tile
        ]
        if use_bias:
            in_specs.append(pl.BlockSpec((1, bn), lambda i, j: (0, j)))
        out_spec = pl.BlockSpec((tm, bn), lambda i, j: (i, j))
        dims = ("parallel", "arbitrary")

    args = [x, w_kn] + ([bias_row] if use_bias else [])
    return pl.pallas_call(
        kernel,
        out_shape=jax.ShapeDtypeStruct((B, N), x.dtype),
        grid=grid,
        in_specs=in_specs,
        out_specs=out_spec,
        compiler_params=pltpu.CompilerParams(
            dimension_semantics=dims,
            vmem_limit_bytes=vmem_limit,
        ),
    )(*args)


# --------------------------------------------------------------------------- #
# LinearTransform wrapper (parameter setup + fused-weight construction at init)
# --------------------------------------------------------------------------- #
class LinearTransform:
    def __init__(self, in_l_max, out_l_max, in_features, out_features,
                 in_paths=None, bias=False, key=None, compute_dtype=jnp.bfloat16):
        self.in_l_max = in_l_max
        self.out_l_max = out_l_max
        self.in_features = in_features
        self.out_features = out_features
        self.compute_dtype = compute_dtype
        self.in_paths = list(in_paths) if in_paths is not None else [1] * (in_l_max + 1)
        assert len(self.in_paths) == in_l_max + 1

        # per-rank segment slices of the flat input feature axis
        sizes = [3 ** l * in_features * self.in_paths[l] for l in range(in_l_max + 1)]
        self.in_dim = sum(sizes)
        offs = [0]
        for s in sizes:
            offs.append(offs[-1] + s)
        self.slices = [(offs[l], offs[l + 1]) for l in range(in_l_max + 1)]

        self.alpha = [(in_features * n) ** (-0.5) for n in self.in_paths]

        # per-rank raw parameters (torch.randn equivalent)
        if key is None:
            key = jax.random.PRNGKey(0)
        self.weights = []
        for l, n_paths in enumerate(self.in_paths[: out_l_max + 1]):
            key, sub = jax.random.split(key)
            self.weights.append(
                jax.random.normal(sub, (out_features, in_features * n_paths), dtype=jnp.float32))
        # nn.Parameter(torch.zeros(out_features)) -> zeros; None when bias=False
        self.bias = jnp.zeros((out_features,), dtype=jnp.float32) if bias else None

        self.out_dim = sum(3 ** l * out_features for l in range(out_l_max + 1))

        self._build_fused_params()

    def _build_fused_params(self):
        """Fold alpha into the weights, transpose to (K, N), lay the 3^l per-component copies of
        each rank's weight on a block diagonal; store the fused weight in the compute dtype."""
        w_full = jnp.zeros((self.in_dim, self.out_dim), dtype=jnp.float32)
        out_off = 0
        for l in range(self.out_l_max + 1):
            k_l = self.in_features * self.in_paths[l]
            ncomp = 3 ** l
            w_kn = (self.weights[l] * self.alpha[l]).T            # (K_l, N), alpha folded
            in_off = self.slices[l][0]
            for c in range(ncomp):
                w_full = w_full.at[
                    in_off + c * k_l: in_off + (c + 1) * k_l,
                    out_off + c * self.out_features: out_off + (c + 1) * self.out_features,
                ].set(w_kn)
            out_off += ncomp * self.out_features
        self.w_fused = w_full.astype(self.compute_dtype)
        if self.bias is not None:
            b = jnp.zeros((1, self.out_dim), dtype=jnp.float32)
            self.bias_fused = b.at[0, : self.out_features].set(self.bias)  # bias only on l=0
        else:
            self.bias_fused = None

    def set_bias(self, b_vec):
        """Update the (l=0 only) bias parameter and refresh the fused bias row."""
        assert self.bias is not None, "module was constructed with bias=False"
        self.bias = jnp.asarray(b_vec, dtype=jnp.float32).reshape(self.out_features)
        b = jnp.zeros((1, self.out_dim), dtype=jnp.float32)
        self.bias_fused = b.at[0, : self.out_features].set(self.bias)

    def __call__(self, x, *, block_m=1024, block_n=None):
        assert x.shape[-1] == self.in_dim, "Incorrect last dimension for x."
        return fused_linear(x, self.w_fused, self.bias_fused,
                            block_m=block_m, block_n=block_n)

    # pure-JAX per-block f32 reference (mirrors the PyTorch module) for verification
    def reference(self, x):
        B = x.shape[0]
        outputs = []
        for l in range(self.out_l_max + 1):
            start, stop = self.slices[l]
            ncomp = 3 ** l
            k_l = self.in_features * self.in_paths[l]
            xl = x[:, start:stop].reshape(B, ncomp, k_l)
            y = jnp.einsum("bck,nk->bcn", xl, self.weights[l] * self.alpha[l])
            if l == 0 and self.bias is not None:
                y = y + self.bias
            outputs.append(y.reshape(B, ncomp * self.out_features))
        return jnp.concatenate(outputs, axis=-1)


# --------------------------------------------------------------------------- #
if __name__ == "__main__":
    key = jax.random.PRNGKey(0)
    k_param, k_bias, k_x, k_x2, k_param3, k_x3 = jax.random.split(key, 6)

    # ---------------- config 1: bias=True, single output block, small batch ----------------
    in_l_max, out_l_max = 2, 2
    in_features, out_features = 8, 8
    in_paths = [1, 2, 1]

    lt = LinearTransform(in_l_max, out_l_max, in_features, out_features,
                         in_paths=in_paths, bias=True, key=k_param)
    # give the zero-initialized bias a nonzero value so the bias path is actually exercised
    lt.set_bias(jax.random.normal(k_bias, (out_features,), dtype=jnp.float32))

    # in_dim = 8 + 3*16 + 9*8 = 128, out_dim = 13*8 = 104
    batch = 4
    x = jax.random.normal(k_x, (batch, lt.in_dim), dtype=jnp.float32)     # (4, 128)
    out = lt(x)
    jax.block_until_ready(out)
    ref = lt.reference(x)
    assert out.shape == (batch, lt.out_dim)
    assert jnp.allclose(out, ref, atol=2e-2, rtol=2e-2)

    # ---------------- config 1b: multi-step batch grid (tm = 48, grid_m = 2) ----------------
    batch2 = 96
    x2 = jax.random.normal(k_x2, (batch2, lt.in_dim), dtype=jnp.float32)  # (96, 128)
    out2 = lt(x2)
    jax.block_until_ready(out2)
    ref2 = lt.reference(x2)
    assert out2.shape == (batch2, lt.out_dim)
    assert jnp.allclose(out2, ref2, atol=2e-2, rtol=2e-2)

    # ---------------- config 2: bias=False, 2-D grid with output-column tiling ----------------
    lt3 = LinearTransform(1, 1, 64, 128, in_paths=None, bias=False, key=k_param3)
    # in_dim = 64 + 3*64 = 256, out_dim = 128 + 3*128 = 512
    batch3 = 96
    x3 = jax.random.normal(k_x3, (batch3, lt3.in_dim), dtype=jnp.float32)  # (96, 256)
    out3 = lt3(x3, block_n=256)                                            # grid = (2, 2)
    jax.block_until_ready(out3)
    ref3 = lt3.reference(x3)
    assert out3.shape == (batch3, lt3.out_dim)
    assert jnp.allclose(out3, ref3, atol=3e-2, rtol=3e-2)

    print("KERNEL_OK")
</pallas_src>

<mosaic_0001>
module attributes {stable_mosaic.version = 11 : i64} {
  func.func @_fused_linear_kernel(%arg0: i32, %arg1: memref<4x128xf32, #tpu.memory_space<vmem>>, %arg2: memref<128x104xbf16, #tpu.memory_space<vmem>>, %arg3: memref<1x104xf32, #tpu.memory_space<vmem>>, %arg4: memref<4x104xf32, #tpu.memory_space<vmem>>) attributes {dimension_semantics = [#tpu.dimension_semantics<parallel>], iteration_bounds = array<i64: 1>, scalar_prefetch = 0 : i64, scratch_operands = 0 : i64, tpu.core_type = #tpu.core_type<tc>, window_params = [{transform_indices = @transform_0, window_bounds = array<i64: 4, 128>}, {pipeline_mode = #tpu.pipeline_mode<synchronous>, transform_indices = @transform_1, window_bounds = array<i64: 128, 104>}, {pipeline_mode = #tpu.pipeline_mode<synchronous>, transform_indices = @transform_2, window_bounds = array<i64: 1, 104>}, {transform_indices = @transform_3, window_bounds = array<i64: 4, 104>}]} {
    %c0 = arith.constant 0 : index
    %c0_0 = arith.constant 0 : index
    %0 = vector.load %arg1[%c0, %c0_0] : memref<4x128xf32, #tpu.memory_space<vmem>>, vector<4x128xf32>
    %1 = arith.truncf %0 : vector<4x128xf32> to vector<4x128xbf16>
    %c0_1 = arith.constant 0 : index
    %c0_2 = arith.constant 0 : index
    %2 = vector.load %arg2[%c0_1, %c0_2] : memref<128x104xbf16, #tpu.memory_space<vmem>>, vector<128x104xbf16>
    %cst = arith.constant dense<0.000000e+00> : vector<4x104xf32>
    %3 = tpu.matmul %1, %2, %cst {dimension_numbers = #tpu.dot_dimension_numbers<[1], [0], [0], [1], [0, 0, 1, 1], [], []>} : vector<4x128xbf16>, vector<128x104xbf16>, vector<4x104xf32> -> vector<4x104xf32>
    %c0_3 = arith.constant 0 : index
    %c0_4 = arith.constant 0 : index
    %4 = vector.load %arg3[%c0_3, %c0_4] : memref<1x104xf32, #tpu.memory_space<vmem>>, vector<1x104xf32>
    %5 = vector.broadcast %4 : vector<1x104xf32> to vector<4x104xf32>
    %6 = arith.addf %3, %5 : vector<4x104xf32>
    %c0_5 = arith.constant 0 : index
    %c0_6 = arith.constant 0 : index
    %7 = vector.load %arg4[%c0_5, %c0_6] : memref<4x104xf32, #tpu.memory_space<vmem>>, vector<4x104xf32>
    tpu.vector_store %arg4[%c0_5, %c0_6], %6 {strides = array<i32>} : memref<4x104xf32, #tpu.memory_space<vmem>>, vector<4x104xf32>,
    return
  }
  func.func @transform_0(%arg0: i32) -> (i32, i32) {
    %c0_i32 = arith.constant 0 : i32
    %c0_i32_0 = arith.constant 0 : i32
    return %arg0, %c0_i32 : i32, i32
  }
  func.func @transform_1(%arg0: i32) -> (i32, i32) {
    %c0_i32 = arith.constant 0 : i32
    %c0_i32_0 = arith.constant 0 : i32
    %c0_i32_1 = arith.constant 0 : i32
    return %c0_i32, %c0_i32_0 : i32, i32
  }
  func.func @transform_2(%arg0: i32) -> (i32, i32) {
    %c0_i32 = arith.constant 0 : i32
    %c0_i32_0 = arith.constant 0 : i32
    %c0_i32_1 = arith.constant 0 : i32
    return %c0_i32, %c0_i32_0 : i32, i32
  }
  func.func @transform_3(%arg0: i32) -> (i32, i32) {
    %c0_i32 = arith.constant 0 : i32
    %c0_i32_0 = arith.constant 0 : i32
    return %arg0, %c0_i32 : i32, i32
  }
}

</mosaic_0001>

<bundles_post_ra>
// kernel: tpu_custom_call.1
= control target key start
LH: loop header
LB: loop body
LE: loop exit
PB: predicated region body
PF: predicated region fallthrough
CT: control target
= control target key end

     0   :  { %v218_v1 = vmov 0.0   ;;  %vm219_vm0 = vmmov 0   ;;  %s283_s0 = inlined_call_operand.vmem [shape: f32[4,128], index: 0, kind: input, shape index: {}]   ;;  %s284_s1 = inlined_call_operand.vmem [shape: bf16[128,104], index: 1, kind: input, shape index: {}]   ;;  %s285_s2 = inlined_call_operand.vmem [shape: f32[1,104], index: 2, kind: input, shape index: {}]   ;;  %s286_s3 = inlined_call_operand.hbm [shape: f32[4,104], index: 3, kind: output, shape index: {}]  }
   0x1   :  { %v186_v0 = vld [vmem:[%s284_s1] sm:$0xff]   ;;  %163 = vmatprep.subr.bf16.mxu0 %v218_v1  ;;  %v187_v2 = vld [vmem:[%s284_s1 + $0x8] sm:$0xff]   ;;  %179 = vmatprep.mubr.msk.bf16.mxu0 %vm219_vm0, %v218_v1  ;;  %v188_v3 = vld [vmem:[%s284_s1 + $0x10] sm:$0xff]  }
   0x2   :  { %164 = vmatpush3.bf16.msra.mxu0 %v186_v0 }
   0x3   :  { %165 = vmatprep.subr.bf16.mxu0 %v218_v1 }
   0x6   :  { %166 = vmatpush3.bf16.msra.mxu0 %v187_v2 }
   0x7   :  { %167 = vmatprep.subr.bf16.mxu0 %v218_v1 }
   0x8   :  { %8 = vsyncpa [#allocation3], 0  ;;  %v189_v4 = vld [vmem:[%s284_s1 + $0x18] sm:$0xff]   ;;  %v190_v5 = vld [vmem:[%s284_s1 + $0x20] sm:$0xff]   ;;  %s220_s5 = smov [#allocation2]   ;;  %vm129_vm1 = vcmask 846848  }
   0x9   :  { %v191_v6 = vld [vmem:[%s284_s1 + $0x28] sm:$0xff]   ;;  %v192_v7 = vld [vmem:[%s284_s1 + $0x30] sm:$0xff]   ;;  %v193_v8 = vld [vmem:[%s284_s1 + $0x38] sm:$0xff]   ;;  %s137_s6 = sshll.u32 %s220_s5, 4  ;;  %s138_s6 = int_to_ptr.vmem [resolvable:$true] %s137_s6 }
   0xa   :  { %168 = vmatpush3.bf16.msra.mxu0 %v188_v3  ;;  %v16_v9 = vld [vmem:[%s283_s0] sm:$0xf]  ;;  %s194_s1 = scalar_lea.vmem %s138_s6, 64  ;;  %p199_p1 = scmp.lt.s32.totalorder %s138_s6, %s138_s6 }
   0xb   :  { %169 = vmatprep.subr.bf16.mxu0 %v218_v1  ;;  %v17_v10 = vpack.c.bf16 %v16_v9, %v16_v9  ;;  %v145_v11 = vld [vmem:[%s285_s2] ss:$0 sm:$0xff]  ;;  %p195_p0 = scmp.ne.s32.totalorder %s138_s6, %s194_s1  ;;  %p200_p2 = scmp.lt.s32.totalorder %s194_s1, %s194_s1 }
   0xd   :  { %p201_p3 = por %p200_p2, %p199_p1 }
   0xe   :  { %170 = vmatpush3.bf16.msra.mxu0 %v189_v4 }
   0xf   :  { %171 = vmatprep.subr.bf16.mxu0 %v218_v1  ;;  %p202_p4 = pnand %p201_p3, %p195_p0 }
  0x12   :  { %172 = vmatpush3.bf16.msra.mxu0 %v190_v5 }
  0x13   :  { %173 = vmatprep.subr.bf16.mxu0 %v218_v1 }
  0x16   :  { %174 = vmatpush3.bf16.msra.mxu0 %v191_v6 }
  0x17   :  { %175 = vmatprep.subr.bf16.mxu0 %v218_v1 }
  0x1a   :  { %176 = vmatpush3.bf16.msra.mxu0 %v192_v7 }
  0x1b   :  { %177 = vmatprep.subr.bf16.mxu0 %v218_v1 }
  0x1e   :  { %178 = vmatpush3.bf16.msra.mxu0 %v193_v8 }
  0x21   :  { %180 = vmatmul.mubr.bf16.vlgmr.msra.gmra.mrb[0].mxu0 %v17_v10 }
  0xf4   :  { %v123_v12 = vpop.f32.mrb[0].mxu0 }
  0xf5   :  { %v124_v13 = vadd.f32 %v145_v11, %v123_v12  ;;  %v181_v14 = vpop.f32.mrb[1].mxu0 }
  0xf6   :  { %v126_v15 = vpop.f32.mrb[2].mxu0 }
  0xf7   :  { %v182_v16 = vpop.f32.mrb[3].mxu0  ;;  %130 = vst.msk [vmem:[#allocation2] sm:$0xf] %vm129_vm1, %v124_v13 }
  0xf8   :  { %205 = shalt.err (!%p202_p4)
}
  0xf9   :  { %s206_s2 = scalar_lea.hbm %s286_s3, 64 }
  0xfa   :  { %p207_p5 = scmp.ne.s32.totalorder %s286_s3, %s206_s2  ;;  %p210_p6 = scmp.lt.u32.totalorder %s206_s2, %s286_s3 }
  0xfc   :  { %p212_p7 = pnand %p210_p6, %p207_p5 }
  0xfe   :  { %215 = shalt.err (!%p212_p7)
}
  0xff   :  { %140 = dma.vmem_to_hbm [thread:$0]  %s138_s6, 64, %s286_s3, [#allocation3]  }
 0x100   :  { %216 = dma.done.wait [#allocation3], 64  }
 0x101   :  { %217 = vsyncadd [#allocation3], 4294967232 }
 0x102   :  { %144 = vsyncpa [#allocation3], 1 }

</bundles_post_ra>
